<compile_context>
chip_gen: v5e
topology: v5e:2x2
jax: 0.10.0
libtpu: 0.0.40
codegen_flags: <defaults>
</compile_context>

<pallas_src>
import functools

import jax
import jax.numpy as jnp
from jax import lax
from jax.experimental import pallas as pl
from jax.experimental.pallas import tpu as pltpu
import numpy as np


def noisy_rnn_kernel(x_ref, ew_ref, eb_ref, aw_ref, dw_ref, db_ref, o_ref,
                     *, eps, alpha):
    # x_ref:  (T*Bp, Din)        time-major, batch-padded, flattened input
    # ew_ref: (Din, n_units)     E weight (transposed for right-matmul)
    # eb_ref: (1, n_units)       E bias
    # aw_ref: (n_units, 2*n)     fused [A | W]
    # dw_ref: (n_units, n_out)   D weight (transposed)
    # db_ref: (1, n_out)         D bias
    # o_ref:  (Bp, n_out)
    n_units = aw_ref.shape[0]
    bsz = o_ref.shape[0]
    T = x_ref.shape[0] // bsz

    Ew = ew_ref[...]
    Eb = eb_ref[...]
    AW = aw_ref[...]

    # Hoisted input projection: one big matmul for all timesteps.
    Z = jnp.dot(x_ref[...], Ew, preferred_element_type=jnp.float32) + Eb

    h = jnp.zeros((bsz, n_units), dtype=jnp.float32)

    # Fully unrolled recurrence (T is small & static): 1 MXU matmul per step.
    for i in range(T):
        z = lax.slice_in_dim(Z, i * bsz, (i + 1) * bsz, axis=0)  # (Bp, n_units)
        r = jnp.dot(h, AW, preferred_element_type=jnp.float32)   # (Bp, 2*n_units)
        hA = r[:, :n_units]
        hW = r[:, n_units:]
        h = h + eps * (alpha * hA + jnp.tanh(hW + z))

    out = jnp.dot(h, dw_ref[...], preferred_element_type=jnp.float32) + db_ref[...]
    o_ref[...] = out.astype(o_ref.dtype)


def noisy_rnn_forward(x, params, *, eps=0.01, beta=0.8, gamma_A=0.01,
                      gamma_W=0.01, alpha=1.0):
    """x: (batch, T, input_dim) float32. Returns (batch, output_classes)."""
    E_w, E_b, B_p, C_p, D_w, D_b = (params["E_w"], params["E_b"], params["B"],
                                    params["C"], params["D_w"], params["D_b"])
    batch, T, input_dim = x.shape
    n_units = B_p.shape[0]
    n_out = D_w.shape[0]

    # --- pure parameter preprocessing (no data dependence) ---
    I = jnp.eye(n_units, dtype=jnp.float32)
    A = beta * (B_p - B_p.T) + (1.0 - beta) * (B_p + B_p.T) - gamma_A * I
    W = beta * (C_p - C_p.T) + (1.0 - beta) * (C_p + C_p.T) - gamma_W * I
    AW = jnp.concatenate([A, W], axis=1)                     # (n_units, 2*n_units)

    ew = E_w.T                                               # (Din, n_units)
    eb = E_b.reshape(1, n_units)
    dw = D_w.T                                               # (n_units, n_out)
    db = D_b.reshape(1, n_out)

    # --- layout glue: time-major, batch padded to the 8-sublane tile ---
    b_pad = ((batch + 7) // 8) * 8
    x_tm = jnp.transpose(x, (1, 0, 2))                       # (T, batch, Din)
    if b_pad != batch:
        x_tm = jnp.pad(x_tm, ((0, 0), (0, b_pad - batch), (0, 0)))
    x_flat = x_tm.reshape(T * b_pad, input_dim)              # (T*Bp, Din)

    kernel = functools.partial(noisy_rnn_kernel, eps=eps, alpha=alpha)

    # Tiny operands: single-invocation kernel, full arrays resident in VMEM.
    # TODO(synk): if T/batch grow large (esp. v7x's 64 MiB VMEM), tile over T
    # with a BlockSpec grid and shard batch across cores with
    # dimension_semantics=("parallel",).
    out = pl.pallas_call(
        kernel,
        out_shape=jax.ShapeDtypeStruct((b_pad, n_out), jnp.float32),
        in_specs=[pl.BlockSpec(memory_space=pltpu.MemorySpace.VMEM)] * 6,
        out_specs=pl.BlockSpec(memory_space=pltpu.MemorySpace.VMEM),
    )(x_flat, ew, eb, AW, dw, db)
    return out[:batch]


def noisy_rnn_reference(x, params, *, eps=0.01, beta=0.8, gamma_A=0.01,
                        gamma_W=0.01, alpha=1.0):
    """Pure-JAX reference matching the PyTorch forward (test mode, base)."""
    E_w, E_b, B_p, C_p, D_w, D_b = (params["E_w"], params["E_b"], params["B"],
                                    params["C"], params["D_w"], params["D_b"])
    n_units = B_p.shape[0]
    I = jnp.eye(n_units, dtype=jnp.float32)
    A = beta * (B_p - B_p.T) + (1 - beta) * (B_p + B_p.T) - gamma_A * I
    W = beta * (C_p - C_p.T) + (1 - beta) * (C_p + C_p.T) - gamma_W * I
    T = x.shape[1]
    h = jnp.zeros((x.shape[0], n_units), jnp.float32)
    for i in range(T):
        z = x[:, i, :] @ E_w.T + E_b
        h_update = alpha * (h @ A) + jnp.tanh(h @ W + z)
        h = h + eps * h_update
    return h @ D_w.T + D_b


if __name__ == "__main__":
    # module hyperparams (small synthetic sizes)
    batch, T, input_dim = 2, 8, 16
    n_units, output_classes = 32, 10
    eps, beta, gamma_A, gamma_W, alpha, init_std = 0.01, 0.8, 0.01, 0.01, 1.0, 1.0

    key = jax.random.PRNGKey(0)
    k = jax.random.split(key, 8)

    params = {
        # nn.Linear(input_dim, n_units): weight (n_units, input_dim), bias (n_units)
        "E_w": jax.random.normal(k[0], (n_units, input_dim), jnp.float32) * 0.1,
        "E_b": jax.random.normal(k[1], (n_units,), jnp.float32) * 0.1,
        # nn.Linear(n_units, output_classes)
        "D_w": jax.random.normal(k[2], (output_classes, n_units), jnp.float32) * 0.1,
        "D_b": jax.random.normal(k[3], (output_classes,), jnp.float32) * 0.1,
        # gaussian_init_(n_units, std=init_std)
        "B": jax.random.normal(k[4], (n_units, n_units), jnp.float32) * init_std / np.sqrt(n_units),
        "C": jax.random.normal(k[5], (n_units, n_units), jnp.float32) * init_std / np.sqrt(n_units),
        # self.d = rand*0 + eps  (only used by solver='noisy'; unused here)
    }

    x = jax.random.normal(k[6], (batch, T, input_dim), jnp.float32)

    out = noisy_rnn_forward(x, params, eps=eps, beta=beta, gamma_A=gamma_A,
                            gamma_W=gamma_W, alpha=alpha)
    out = jax.block_until_ready(out)

    ref = noisy_rnn_reference(x, params, eps=eps, beta=beta, gamma_A=gamma_A,
                              gamma_W=gamma_W, alpha=alpha)
    np.testing.assert_allclose(np.asarray(out), np.asarray(ref),
                               rtol=1e-5, atol=1e-5)
    print("KERNEL_OK")
</pallas_src>

<mosaic_0001>
module attributes {stable_mosaic.version = 11 : i64} {
  func.func @noisy_rnn_kernel(%arg0: memref<64x16xf32, #tpu.memory_space<vmem>>, %arg1: memref<16x32xf32, #tpu.memory_space<vmem>>, %arg2: memref<1x32xf32, #tpu.memory_space<vmem>>, %arg3: memref<32x64xf32, #tpu.memory_space<vmem>>, %arg4: memref<32x10xf32, #tpu.memory_space<vmem>>, %arg5: memref<1x10xf32, #tpu.memory_space<vmem>>, %arg6: memref<8x10xf32, #tpu.memory_space<vmem>>) attributes {dimension_semantics = [], scalar_prefetch = 0 : i64, scratch_operands = 0 : i64, tpu.core_type = #tpu.core_type<tc>} {
    %c0 = arith.constant 0 : index
    %c0_0 = arith.constant 0 : index
    %0 = vector.load %arg1[%c0, %c0_0] : memref<16x32xf32, #tpu.memory_space<vmem>>, vector<16x32xf32>
    %c0_1 = arith.constant 0 : index
    %c0_2 = arith.constant 0 : index
    %1 = vector.load %arg2[%c0_1, %c0_2] : memref<1x32xf32, #tpu.memory_space<vmem>>, vector<1x32xf32>
    %c0_3 = arith.constant 0 : index
    %c0_4 = arith.constant 0 : index
    %2 = vector.load %arg3[%c0_3, %c0_4] : memref<32x64xf32, #tpu.memory_space<vmem>>, vector<32x64xf32>
    %c0_5 = arith.constant 0 : index
    %c0_6 = arith.constant 0 : index
    %3 = vector.load %arg0[%c0_5, %c0_6] : memref<64x16xf32, #tpu.memory_space<vmem>>, vector<64x16xf32>
    %cst = arith.constant dense<0.000000e+00> : vector<64x32xf32>
    %4 = tpu.matmul %3, %0, %cst {dimension_numbers = #tpu.dot_dimension_numbers<[1], [0], [0], [1], [0, 0, 1, 1], [], []>} : vector<64x16xf32>, vector<16x32xf32>, vector<64x32xf32> -> vector<64x32xf32>
    %5 = vector.broadcast %1 : vector<1x32xf32> to vector<64x32xf32>
    %6 = arith.addf %4, %5 : vector<64x32xf32>
    %cst_7 = arith.constant 0.000000e+00 : f32
    %7 = vector.broadcast %cst_7 : f32 to vector<8x32xf32>
    %8 = vector.extract_strided_slice %6 {offsets = [0, 0], sizes = [8, 32], strides = [1, 1]} : vector<64x32xf32> to vector<8x32xf32>
    %cst_8 = arith.constant dense<0.000000e+00> : vector<8x64xf32>
    %9 = tpu.matmul %7, %2, %cst_8 {dimension_numbers = #tpu.dot_dimension_numbers<[1], [0], [0], [1], [0, 0, 1, 1], [], []>} : vector<8x32xf32>, vector<32x64xf32>, vector<8x64xf32> -> vector<8x64xf32>
    %10 = vector.extract_strided_slice %9 {offsets = [0, 0], sizes = [8, 32], strides = [1, 1]} : vector<8x64xf32> to vector<8x32xf32>
    %11 = vector.extract_strided_slice %9 {offsets = [0, 32], sizes = [8, 32], strides = [1, 1]} : vector<8x64xf32> to vector<8x32xf32>
    %cst_9 = arith.constant 1.000000e+00 : f32
    %12 = vector.broadcast %cst_9 : f32 to vector<8x32xf32>
    %13 = arith.mulf %12, %10 : vector<8x32xf32>
    %14 = arith.addf %11, %8 : vector<8x32xf32>
    %15 = math.tanh %14 : vector<8x32xf32>
    %16 = arith.addf %13, %15 : vector<8x32xf32>
    %cst_10 = arith.constant 0.00999999977 : f32
    %17 = vector.broadcast %cst_10 : f32 to vector<8x32xf32>
    %18 = arith.mulf %17, %16 : vector<8x32xf32>
    %19 = arith.addf %7, %18 : vector<8x32xf32>
    %20 = vector.extract_strided_slice %6 {offsets = [8, 0], sizes = [8, 32], strides = [1, 1]} : vector<64x32xf32> to vector<8x32xf32>
    %cst_11 = arith.constant dense<0.000000e+00> : vector<8x64xf32>
    %21 = tpu.matmul %19, %2, %cst_11 {dimension_numbers = #tpu.dot_dimension_numbers<[1], [0], [0], [1], [0, 0, 1, 1], [], []>} : vector<8x32xf32>, vector<32x64xf32>, vector<8x64xf32> -> vector<8x64xf32>
    %22 = vector.extract_strided_slice %21 {offsets = [0, 0], sizes = [8, 32], strides = [1, 1]} : vector<8x64xf32> to vector<8x32xf32>
    %23 = vector.extract_strided_slice %21 {offsets = [0, 32], sizes = [8, 32], strides = [1, 1]} : vector<8x64xf32> to vector<8x32xf32>
    %cst_12 = arith.constant 1.000000e+00 : f32
    %24 = vector.broadcast %cst_12 : f32 to vector<8x32xf32>
    %25 = arith.mulf %24, %22 : vector<8x32xf32>
    %26 = arith.addf %23, %20 : vector<8x32xf32>
    %27 = math.tanh %26 : vector<8x32xf32>
    %28 = arith.addf %25, %27 : vector<8x32xf32>
    %cst_13 = arith.constant 0.00999999977 : f32
    %29 = vector.broadcast %cst_13 : f32 to vector<8x32xf32>
    %30 = arith.mulf %29, %28 : vector<8x32xf32>
    %31 = arith.addf %19, %30 : vector<8x32xf32>
    %32 = vector.extract_strided_slice %6 {offsets = [16, 0], sizes = [8, 32], strides = [1, 1]} : vector<64x32xf32> to vector<8x32xf32>
    %cst_14 = arith.constant dense<0.000000e+00> : vector<8x64xf32>
    %33 = tpu.matmul %31, %2, %cst_14 {dimension_numbers = #tpu.dot_dimension_numbers<[1], [0], [0], [1], [0, 0, 1, 1], [], []>} : vector<8x32xf32>, vector<32x64xf32>, vector<8x64xf32> -> vector<8x64xf32>
    %34 = vector.extract_strided_slice %33 {offsets = [0, 0], sizes = [8, 32], strides = [1, 1]} : vector<8x64xf32> to vector<8x32xf32>
    %35 = vector.extract_strided_slice %33 {offsets = [0, 32], sizes = [8, 32], strides = [1, 1]} : vector<8x64xf32> to vector<8x32xf32>
    %cst_15 = arith.constant 1.000000e+00 : f32
    %36 = vector.broadcast %cst_15 : f32 to vector<8x32xf32>
    %37 = arith.mulf %36, %34 : vector<8x32xf32>
    %38 = arith.addf %35, %32 : vector<8x32xf32>
    %39 = math.tanh %38 : vector<8x32xf32>
    %40 = arith.addf %37, %39 : vector<8x32xf32>
    %cst_16 = arith.constant 0.00999999977 : f32
    %41 = vector.broadcast %cst_16 : f32 to vector<8x32xf32>
    %42 = arith.mulf %41, %40 : vector<8x32xf32>
    %43 = arith.addf %31, %42 : vector<8x32xf32>
    %44 = vector.extract_strided_slice %6 {offsets = [24, 0], sizes = [8, 32], strides = [1, 1]} : vector<64x32xf32> to vector<8x32xf32>
    %cst_17 = arith.constant dense<0.000000e+00> : vector<8x64xf32>
    %45 = tpu.matmul %43, %2, %cst_17 {dimension_numbers = #tpu.dot_dimension_numbers<[1], [0], [0], [1], [0, 0, 1, 1], [], []>} : vector<8x32xf32>, vector<32x64xf32>, vector<8x64xf32> -> vector<8x64xf32>
    %46 = vector.extract_strided_slice %45 {offsets = [0, 0], sizes = [8, 32], strides = [1, 1]} : vector<8x64xf32> to vector<8x32xf32>
    %47 = vector.extract_strided_slice %45 {offsets = [0, 32], sizes = [8, 32], strides = [1, 1]} : vector<8x64xf32> to vector<8x32xf32>
    %cst_18 = arith.constant 1.000000e+00 : f32
    %48 = vector.broadcast %cst_18 : f32 to vector<8x32xf32>
    %49 = arith.mulf %48, %46 : vector<8x32xf32>
    %50 = arith.addf %47, %44 : vector<8x32xf32>
    %51 = math.tanh %50 : vector<8x32xf32>
    %52 = arith.addf %49, %51 : vector<8x32xf32>
    %cst_19 = arith.constant 0.00999999977 : f32
    %53 = vector.broadcast %cst_19 : f32 to vector<8x32xf32>
    %54 = arith.mulf %53, %52 : vector<8x32xf32>
    %55 = arith.addf %43, %54 : vector<8x32xf32>
    %56 = vector.extract_strided_slice %6 {offsets = [32, 0], sizes = [8, 32], strides = [1, 1]} : vector<64x32xf32> to vector<8x32xf32>
    %cst_20 = arith.constant dense<0.000000e+00> : vector<8x64xf32>
    %57 = tpu.matmul %55, %2, %cst_20 {dimension_numbers = #tpu.dot_dimension_numbers<[1], [0], [0], [1], [0, 0, 1, 1], [], []>} : vector<8x32xf32>, vector<32x64xf32>, vector<8x64xf32> -> vector<8x64xf32>
    %58 = vector.extract_strided_slice %57 {offsets = [0, 0], sizes = [8, 32], strides = [1, 1]} : vector<8x64xf32> to vector<8x32xf32>
    %59 = vector.extract_strided_slice %57 {offsets = [0, 32], sizes = [8, 32], strides = [1, 1]} : vector<8x64xf32> to vector<8x32xf32>
    %cst_21 = arith.constant 1.000000e+00 : f32
    %60 = vector.broadcast %cst_21 : f32 to vector<8x32xf32>
    %61 = arith.mulf %60, %58 : vector<8x32xf32>
    %62 = arith.addf %59, %56 : vector<8x32xf32>
    %63 = math.tanh %62 : vector<8x32xf32>
    %64 = arith.addf %61, %63 : vector<8x32xf32>
    %cst_22 = arith.constant 0.00999999977 : f32
    %65 = vector.broadcast %cst_22 : f32 to vector<8x32xf32>
    %66 = arith.mulf %65, %64 : vector<8x32xf32>
    %67 = arith.addf %55, %66 : vector<8x32xf32>
    %68 = vector.extract_strided_slice %6 {offsets = [40, 0], sizes = [8, 32], strides = [1, 1]} : vector<64x32xf32> to vector<8x32xf32>
    %cst_23 = arith.constant dense<0.000000e+00> : vector<8x64xf32>
    %69 = tpu.matmul %67, %2, %cst_23 {dimension_numbers = #tpu.dot_dimension_numbers<[1], [0], [0], [1], [0, 0, 1, 1], [], []>} : vector<8x32xf32>, vector<32x64xf32>, vector<8x64xf32> -> vector<8x64xf32>
    %70 = vector.extract_strided_slice %69 {offsets = [0, 0], sizes = [8, 32], strides = [1, 1]} : vector<8x64xf32> to vector<8x32xf32>
    %71 = vector.extract_strided_slice %69 {offsets = [0, 32], sizes = [8, 32], strides = [1, 1]} : vector<8x64xf32> to vector<8x32xf32>
    %cst_24 = arith.constant 1.000000e+00 : f32
    %72 = vector.broadcast %cst_24 : f32 to vector<8x32xf32>
    %73 = arith.mulf %72, %70 : vector<8x32xf32>
    %74 = arith.addf %71, %68 : vector<8x32xf32>
    %75 = math.tanh %74 : vector<8x32xf32>
    %76 = arith.addf %73, %75 : vector<8x32xf32>
    %cst_25 = arith.constant 0.00999999977 : f32
    %77 = vector.broadcast %cst_25 : f32 to vector<8x32xf32>
    %78 = arith.mulf %77, %76 : vector<8x32xf32>
    %79 = arith.addf %67, %78 : vector<8x32xf32>
    %80 = vector.extract_strided_slice %6 {offsets = [48, 0], sizes = [8, 32], strides = [1, 1]} : vector<64x32xf32> to vector<8x32xf32>
    %cst_26 = arith.constant dense<0.000000e+00> : vector<8x64xf32>
    %81 = tpu.matmul %79, %2, %cst_26 {dimension_numbers = #tpu.dot_dimension_numbers<[1], [0], [0], [1], [0, 0, 1, 1], [], []>} : vector<8x32xf32>, vector<32x64xf32>, vector<8x64xf32> -> vector<8x64xf32>
    %82 = vector.extract_strided_slice %81 {offsets = [0, 0], sizes = [8, 32], strides = [1, 1]} : vector<8x64xf32> to vector<8x32xf32>
    %83 = vector.extract_strided_slice %81 {offsets = [0, 32], sizes = [8, 32], strides = [1, 1]} : vector<8x64xf32> to vector<8x32xf32>
    %cst_27 = arith.constant 1.000000e+00 : f32
    %84 = vector.broadcast %cst_27 : f32 to vector<8x32xf32>
    %85 = arith.mulf %84, %82 : vector<8x32xf32>
    %86 = arith.addf %83, %80 : vector<8x32xf32>
    %87 = math.tanh %86 : vector<8x32xf32>
    %88 = arith.addf %85, %87 : vector<8x32xf32>
    %cst_28 = arith.constant 0.00999999977 : f32
    %89 = vector.broadcast %cst_28 : f32 to vector<8x32xf32>
    %90 = arith.mulf %89, %88 : vector<8x32xf32>
    %91 = arith.addf %79, %90 : vector<8x32xf32>
    %92 = vector.extract_strided_slice %6 {offsets = [56, 0], sizes = [8, 32], strides = [1, 1]} : vector<64x32xf32> to vector<8x32xf32>
    %cst_29 = arith.constant dense<0.000000e+00> : vector<8x64xf32>
    %93 = tpu.matmul %91, %2, %cst_29 {dimension_numbers = #tpu.dot_dimension_numbers<[1], [0], [0], [1], [0, 0, 1, 1], [], []>} : vector<8x32xf32>, vector<32x64xf32>, vector<8x64xf32> -> vector<8x64xf32>
    %94 = vector.extract_strided_slice %93 {offsets = [0, 0], sizes = [8, 32], strides = [1, 1]} : vector<8x64xf32> to vector<8x32xf32>
    %95 = vector.extract_strided_slice %93 {offsets = [0, 32], sizes = [8, 32], strides = [1, 1]} : vector<8x64xf32> to vector<8x32xf32>
    %cst_30 = arith.constant 1.000000e+00 : f32
    %96 = vector.broadcast %cst_30 : f32 to vector<8x32xf32>
    %97 = arith.mulf %96, %94 : vector<8x32xf32>
    %98 = arith.addf %95, %92 : vector<8x32xf32>
    %99 = math.tanh %98 : vector<8x32xf32>
    %100 = arith.addf %97, %99 : vector<8x32xf32>
    %cst_31 = arith.constant 0.00999999977 : f32
    %101 = vector.broadcast %cst_31 : f32 to vector<8x32xf32>
    %102 = arith.mulf %101, %100 : vector<8x32xf32>
    %103 = arith.addf %91, %102 : vector<8x32xf32>
    %c0_32 = arith.constant 0 : index
    %c0_33 = arith.constant 0 : index
    %104 = vector.load %arg4[%c0_32, %c0_33] : memref<32x10xf32, #tpu.memory_space<vmem>>, vector<32x10xf32>
    %cst_34 = arith.constant dense<0.000000e+00> : vector<8x10xf32>
    %105 = tpu.matmul %103, %104, %cst_34 {dimension_numbers = #tpu.dot_dimension_numbers<[1], [0], [0], [1], [0, 0, 1, 1], [], []>} : vector<8x32xf32>, vector<32x10xf32>, vector<8x10xf32> -> vector<8x10xf32>
    %c0_35 = arith.constant 0 : index
    %c0_36 = arith.constant 0 : index
    %106 = vector.load %arg5[%c0_35, %c0_36] : memref<1x10xf32, #tpu.memory_space<vmem>>, vector<1x10xf32>
    %107 = vector.broadcast %106 : vector<1x10xf32> to vector<8x10xf32>
    %108 = arith.addf %105, %107 : vector<8x10xf32>
    %c0_37 = arith.constant 0 : index
    %c0_38 = arith.constant 0 : index
    %109 = vector.load %arg6[%c0_37, %c0_38] : memref<8x10xf32, #tpu.memory_space<vmem>>, vector<8x10xf32>
    tpu.vector_store %arg6[%c0_37, %c0_38], %108 {strides = array<i32>} : memref<8x10xf32, #tpu.memory_space<vmem>>, vector<8x10xf32>,
    return
  }
}

</mosaic_0001>

<bundles_post_ra>
// kernel: tpu_custom_call.1
= control target key start
LH: loop header
LB: loop body
LE: loop exit
PB: predicated region body
PF: predicated region fallthrough
CT: control target
= control target key end

     0   :  { %vm42_vm0 = vcmask 130048   ;;  %s671_s0 = inlined_call_operand.vmem [shape: f32[64,16], index: 0, kind: input, shape index: {}]   ;;  %s672_s1 = inlined_call_operand.vmem [shape: f32[16,32], index: 1, kind: input, shape index: {}]   ;;  %s673_s2 = inlined_call_operand.vmem [shape: f32[1,32], index: 2, kind: input, shape index: {}]   ;;  %s674_s3 = inlined_call_operand.vmem [shape: f32[32,64], index: 3, kind: input, shape index: {}]   ;;  %s675_s4 = inlined_call_operand.vmem [shape: f32[32,10], index: 4, kind: input, shape index: {}]   ;;  %s676_s5 = inlined_call_operand.vmem [shape: f32[1,10], index: 5, kind: input, shape index: {}]   ;;  %s677_s6 = inlined_call_operand.hbm [shape: f32[8,10], index: 6, kind: output, shape index: {}]  }
   0x1   :  { %v25_v0 = vld [vmem:[%s672_s1 + $0x8] sm:$0xff]  ;;  %v24_v1 = vld [vmem:[%s672_s1] sm:$0xff]  ;;  %v568_v4 = vld [vmem:[%s674_s3 + $0x18] sm:$0xff] }
   0x2   :  { %81 = vmatpush.msra.mxu0 %v25_v0  ;;  %v31_v2 = vld [vmem:[%s671_s0] sm:$0xff]  ;;  %462 = vmatpush.msra.mxu1 %v25_v0  ;;  %v36_v3 = vld [vmem:[%s671_s0 + $0x28] sm:$0xff] }
   0x3   :  { %463 = vmatpush.msra.mxu2 %v25_v0  ;;  %196 = vmatpush.msra.mxu3 %v568_v4 }
   0x4   :  { %82 = vmatpush.msra.mxu0 %v24_v1  ;;  %464 = vmatpush.msra.mxu1 %v24_v1 }
   0x5   :  { %11 = vsyncpa [#allocation3], 0  ;;  %446 = vmatmul.msk.f32.vlgmr.msra.gmra.mxu0 %vm42_vm0, %v31_v2  ;;  %451 = vmatmul.msk.f32.vlgmr.msra.gmra.mxu1 %vm42_vm0, %v36_v3  ;;  %v29_v5 = vld [vmem:[%s674_s3 + $0x10] sm:$0xff]  ;;  %v28_v6 = vld [vmem:[%s674_s3 + $0x8] sm:$0xff]  ;;  %v514_v8 = vmov 0.0   ;;  %s515_s13 = smov 32  }
   0x6   :  { %124 = vmatpush.msrb.mxu1 %v568_v4  ;;  %465 = vmatpush.msra.mxu2 %v24_v1  ;;  %v27_v7 = vld [vmem:[%s674_s3] sm:$0xff]  ;;  %v32_v12 = vld [vmem:[%s671_s0 + $0x8] sm:$0xff]  ;;  %v37_v13 = vld [vmem:[%s671_s0 + $0x30] sm:$0xff]  ;;  %s516_s19 = smov 96   ;;  %vm108_vm1 = vcmask 261120   ;;  %s517_s10 = smov [#allocation2]  }
   0x7   :  { %197 = vmatpush.msra.mxu3 %v29_v5  ;;  %v590_v9 = vld [vmem:[%s673_s2] ss:$0 sm:$0xff]  ;;  %452 = vmatmul.msk.f32.vlgmr.msra.gmra.mxu2 %vm42_vm0, %v37_v13  ;;  %v38_v14 = vld [vmem:[%s671_s0 + $0x38] sm:$0xff]  ;;  %v33_v25 = vld [vmem:[%s671_s0 + $0x10] sm:$0xff]  ;;  %s435_s11 = sshll.u32 %s517_s10, 4  ;;  %vm428_vm2 = vcmask 80896   ;;  %s436_s11 = int_to_ptr.vmem [resolvable:$true] %s435_s11 }
   0x8   :  { %160 = vmatpush.msrb.mxu2 %v568_v4  ;;  %125 = vmatpush.msrb.mxu1 %v29_v5  ;;  %v34_v32 = vld [vmem:[%s671_s0 + $0x18] sm:$0xff]  ;;  %v35_v49 = vld [vmem:[%s671_s0 + $0x20] sm:$0xff] }
   0x9   :  { %198 = vmatpush.msra.mxu3 %v28_v6 }
   0xa   :  { %161 = vmatpush.msrb.mxu2 %v29_v5  ;;  %126 = vmatpush.msrb.mxu1 %v28_v6 }
   0xb   :  { %199 = vmatpush.msra.mxu3 %v27_v7 }
   0xc   :  { %162 = vmatpush.msrb.mxu2 %v28_v6  ;;  %127 = vmatpush.msrb.mxu1 %v27_v7 }
   0xd   :  { %304 = vmatpush.msrb.mxu3 %v568_v4  ;;  %128 = vmatmul.f32.vlgmr.msrb.gmra.mxu1 %v514_v8 }
   0xe   :  { %163 = vmatpush.msrb.mxu2 %v27_v7  ;;  %232 = vmatpush.msra.mxu1 %v568_v4 }
   0xf   :  { %305 = vmatpush.msrb.mxu3 %v29_v5  ;;  %447 = vmatmul.msk.f32.gmra.mxu0 %vm42_vm0, %v32_v12 }
  0x10   :  { %233 = vmatpush.msra.mxu1 %v29_v5  ;;  %268 = vmatpush.msra.mxu2 %v568_v4 }
  0x11   :  { %306 = vmatpush.msrb.mxu3 %v28_v6  ;;  %453 = vmatmul.msk.f32.gmra.mxu2 %vm42_vm0, %v38_v14 }
  0x12   :  { %234 = vmatpush.msra.mxu1 %v28_v6  ;;  %269 = vmatpush.msra.mxu2 %v29_v5 }
  0x13   :  { %307 = vmatpush.msrb.mxu3 %v27_v7 }
  0x14   :  { %235 = vmatpush.msra.mxu1 %v27_v7  ;;  %270 = vmatpush.msra.mxu2 %v28_v6 }
  0x16   :  { %340 = vmatpush.msrb.mxu1 %v568_v4  ;;  %271 = vmatpush.msra.mxu2 %v27_v7 }
  0x17   :  { %448 = vmatmul.msk.f32.gmra.mxu0 %vm42_vm0, %v33_v25 }
  0x18   :  { %341 = vmatpush.msrb.mxu1 %v29_v5 }
  0x1a   :  { %342 = vmatpush.msrb.mxu1 %v28_v6 }
  0x1c   :  { %343 = vmatpush.msrb.mxu1 %v27_v7 }
  0x1f   :  { %449 = vmatmul.msk.f32.gmra.mxu0 %vm42_vm0, %v34_v32 }
  0x27   :  { %450 = vmatmul.msk.f32.gmra.mxu0 %vm42_vm0, %v35_v49 }
  0x82   :  { %v84_v10 = vpop.f32.mrf.mxu0  ;;  %v99_v15 = vpop.f32.mrf.mxu1 }
  0x83   :  { %v85_v11 = vadd.f32 %v590_v9, %v84_v10  ;;  %v100_v54 = vadd.f32 %v590_v9, %v99_v15 }
  0x85   :  { %133 = vrot.lane.b32.xlu0 %v85_v11, %s515_s13 }
  0x8a   :  { %v129_v16 = vpop.f32.mrf.mxu1  ;;  %v102_v26 = vpop.f32.mrf.mxu2 }
  0x8b   :  { %v103_v1 = vadd.f32 %v590_v9, %v102_v26 }
  0x8c   :  { %v87_v20 = vpop.f32.mrf.mxu0 }
  0x8d   :  { %v88_v21 = vadd.f32 %v590_v9, %v87_v20 }
  0x8f   :  { %169 = vrot.lane.b32.xlu1 %v88_v21, %s515_s13 }
  0x94   :  { %v616_v27 = vpop.f32.mrf.mxu2  ;;  %v90_v33 = vpop.f32.mrf.mxu0 }
  0x95   :  { %v91_v34 = vadd.f32 %v590_v9, %v90_v33  ;;  %v106_v11 = vadd.f32 %v590_v9, %v616_v27 }
  0x97   :  { %205 = vrot.lane.b32.xlu2 %v91_v34, %s515_s13 }
  0x9c   :  { %v93_v43 = vpop.f32.mrf.mxu0 }
  0x9d   :  { %v94_v44 = vadd.f32 %v590_v9, %v93_v43 }
  0xa4   :  { %v96_v55 = vpop.f32.mrf.mxu0 }
  0xa5   :  { %v97_v56 = vadd.f32 %v590_v9, %v96_v55  ;;  %v400_v9 = vld [vmem:[%s675_s4 + $0x18] sm:$0xff] }
  0xf1   :  { %v206_v39 = vpop.permute.xlu2 %205 }
  0xf7   :  { %v134_v17 = vpop.permute.xlu0 %133 }
  0xf8   :  { %v136_v18 = vadd.f32 %v134_v17, %v129_v16 }
  0xfa   :  { %472 = vtanh.f32 %v136_v18 }
 0x100   :  { %v473_v19 = vpop.eup %472 }
 0x101   :  { %139 = vrot.lane.b32.xlu0 %v473_v19, %s516_s19  ;;  %v170_v28 = vpop.permute.xlu1 %169 }
 0x109   :  { %241 = vrot.lane.b32.xlu0 %v94_v44, %s515_s13 }
 0x173   :  { %v140_v22 = vpop.permute.xlu0 %139 }
 0x174   :  { %v142_v23 = vadd.f32 %v140_v22, %v129_v16 }
 0x176   :  { %v143_v24 = vmul.f32 0.01, %v142_v23 }
 0x178   :  { %454 = vmatmul.msk.f32.vlgmr.msrb.gmra.mxu2 %vm108_vm1, %v143_v24 }
 0x179   :  { %376 = vmatpush.msrb.mxu2 %v568_v4 }
 0x17b   :  { %377 = vmatpush.msrb.mxu2 %v29_v5  ;;  %v242_v50 = vpop.permute.xlu0 %241 }
 0x17d   :  { %378 = vmatpush.msrb.mxu2 %v28_v6 }
 0x17f   :  { %379 = vmatpush.msrb.mxu2 %v27_v7 }
 0x1fb   :  { %v165_v29 = vpop.f32.mrf.mxu2 }
 0x1fc   :  { %v172_v30 = vadd.f32 %v170_v28, %v165_v29  ;;  %v399_v28 = vld [vmem:[%s675_s4 + $0x10] sm:$0xff] }
 0x1fe   :  { %474 = vtanh.f32 %v172_v30  ;;  %v397_v30 = vld [vmem:[%s675_s4] sm:$0xff] }
 0x204   :  { %v475_v31 = vpop.eup %474 }
 0x205   :  { %175 = vrot.lane.b32.xlu1 %v475_v31, %s516_s19 }
 0x277   :  { %v176_v35 = vpop.permute.xlu1 %175 }
 0x278   :  { %v178_v36 = vadd.f32 %v176_v35, %v165_v29  ;;  %v398_v29 = vld [vmem:[%s675_s4 + $0x8] sm:$0xff]  ;;  %v471_v35 = vld [vmem:[%s676_s5] ss:$0 sm:$0xff] }
 0x27a   :  { %v179_v37 = vmul.f32 0.01, %v178_v36 }
 0x27c   :  { %v180_v38 = vadd.f32 %v179_v37, %v143_v24 }
 0x27e   :  { %455 = vmatmul.msk.f32.vlgmr.msra.gmra.mxu3 %vm108_vm1, %v180_v38 }
 0x27f   :  { %420 = vmatpush.msra.mxu3 %v400_v9 }
 0x281   :  { %421 = vmatpush.msra.mxu3 %v399_v28 }
 0x283   :  { %422 = vmatpush.msra.mxu3 %v398_v29 }
 0x285   :  { %423 = vmatpush.msra.mxu3 %v397_v30 }
 0x301   :  { %v201_v40 = vpop.f32.mrf.mxu3 }
 0x302   :  { %v208_v41 = vadd.f32 %v206_v39, %v201_v40 }
 0x304   :  { %476 = vtanh.f32 %v208_v41 }
 0x30a   :  { %v477_v42 = vpop.eup %476 }
 0x30b   :  { %211 = vrot.lane.b32.xlu2 %v477_v42, %s516_s19 }
 0x313   :  { %277 = vrot.lane.b32.xlu2 %v97_v56, %s515_s13 }
 0x365   :  { %v212_v45 = vpop.permute.xlu2 %211 }
 0x366   :  { %v214_v46 = vadd.f32 %v212_v45, %v201_v40 }
 0x368   :  { %v215_v47 = vmul.f32 0.01, %v214_v46 }
 0x36a   :  { %v216_v48 = vadd.f32 %v215_v47, %v180_v38 }
 0x36c   :  { %456 = vmatmul.msk.f32.vlgmr.msra.gmra.mxu1 %vm108_vm1, %v216_v48 }
 0x36d   :  { %v278_v61 = vpop.permute.xlu2 %277 }
 0x3e9   :  { %v237_v51 = vpop.f32.mrf.mxu1 }
 0x3ea   :  { %v244_v52 = vadd.f32 %v242_v50, %v237_v51 }
 0x3ec   :  { %478 = vtanh.f32 %v244_v52 }
 0x3f2   :  { %v479_v53 = vpop.eup %478 }
 0x3f3   :  { %247 = vrot.lane.b32.xlu1 %v479_v53, %s516_s19 }
 0x3fb   :  { %313 = vrot.lane.b32.xlu1 %v100_v54, %s515_s13 }
 0x465   :  { %v248_v57 = vpop.permute.xlu1 %247 }
 0x466   :  { %v250_v58 = vadd.f32 %v248_v57, %v237_v51 }
 0x468   :  { %v251_v59 = vmul.f32 0.01, %v250_v58 }
 0x46a   :  { %v252_v60 = vadd.f32 %v251_v59, %v216_v48 }
 0x46c   :  { %457 = vmatmul.msk.f32.vlgmr.msra.gmra.mxu2 %vm108_vm1, %v252_v60 }
 0x46d   :  { %v314_v6 = vpop.permute.xlu1 %313 }
 0x4ef   :  { %v273_v62 = vpop.f32.mrf.mxu2 }
 0x4f0   :  { %v280_v63 = vadd.f32 %v278_v61, %v273_v62 }
 0x4f2   :  { %480 = vtanh.f32 %v280_v63 }
 0x4f8   :  { %v481_v0 = vpop.eup %480 }
 0x4f9   :  { %283 = vrot.lane.b32.xlu0 %v481_v0, %s516_s19 }
 0x501   :  { %349 = vrot.lane.b32.xlu0 %v103_v1, %s515_s13 }
 0x56b   :  { %v284_v2 = vpop.permute.xlu0 %283 }
 0x56c   :  { %v286_v3 = vadd.f32 %v284_v2, %v273_v62 }
 0x56e   :  { %v287_v4 = vmul.f32 0.01, %v286_v3 }
 0x570   :  { %v288_v5 = vadd.f32 %v287_v4, %v252_v60 }
 0x572   :  { %458 = vmatmul.msk.f32.vlgmr.msrb.gmra.mxu3 %vm108_vm1, %v288_v5 }
 0x573   :  { %v350_v16 = vpop.permute.xlu0 %349 }
 0x5f5   :  { %v309_v7 = vpop.f32.mrf.mxu3 }
 0x5f6   :  { %v316_v8 = vadd.f32 %v314_v6, %v309_v7 }
 0x5f8   :  { %482 = vtanh.f32 %v316_v8 }
 0x5fe   :  { %v483_v10 = vpop.eup %482 }
 0x5ff   :  { %319 = vrot.lane.b32.xlu2 %v483_v10, %s516_s19 }
 0x607   :  { %385 = vrot.lane.b32.xlu2 %v106_v11, %s515_s13  ;;  %s437_s13 = sshll.u32 %s677_s6, 4  ;;  %s438_s13 = int_to_ptr.hbm [resolvable:$true] %s437_s13 }
 0x659   :  { %v320_v12 = vpop.permute.xlu2 %319 }
 0x65a   :  { %v322_v13 = vadd.f32 %v320_v12, %v309_v7 }
 0x65c   :  { %v323_v14 = vmul.f32 0.01, %v322_v13 }
 0x65e   :  { %v324_v15 = vadd.f32 %v323_v14, %v288_v5 }
 0x660   :  { %459 = vmatmul.msk.f32.vlgmr.msrb.gmra.mxu1 %vm108_vm1, %v324_v15 }
 0x661   :  { %v386_v24 = vpop.permute.xlu2 %385 }
 0x6dd   :  { %v345_v17 = vpop.f32.mrf.mxu1 }
 0x6de   :  { %v352_v18 = vadd.f32 %v350_v16, %v345_v17 }
 0x6e0   :  { %484 = vtanh.f32 %v352_v18 }
 0x6e6   :  { %v485_v19 = vpop.eup %484 }
 0x6e7   :  { %355 = vrot.lane.b32.xlu1 %v485_v19, %s516_s19 }
 0x759   :  { %v356_v20 = vpop.permute.xlu1 %355 }
 0x75a   :  { %v358_v21 = vadd.f32 %v356_v20, %v345_v17 }
 0x75c   :  { %v359_v22 = vmul.f32 0.01, %v358_v21 }
 0x75e   :  { %v360_v23 = vadd.f32 %v359_v22, %v324_v15 }
 0x760   :  { %460 = vmatmul.msk.f32.vlgmr.msrb.gmra.mxu2 %vm108_vm1, %v360_v23 }
 0x7e3   :  { %v381_v25 = vpop.f32.mrf.mxu2 }
 0x7e4   :  { %v388_v26 = vadd.f32 %v386_v24, %v381_v25 }
 0x7e6   :  { %486 = vtanh.f32 %v388_v26 }
 0x7ec   :  { %v487_v27 = vpop.eup %486 }
 0x7ed   :  { %391 = vrot.lane.b32.xlu0 %v487_v27, %s516_s19 }
 0x85f   :  { %v392_v31 = vpop.permute.xlu0 %391 }
 0x860   :  { %v394_v32 = vadd.f32 %v392_v31, %v381_v25 }
 0x862   :  { %v395_v33 = vmul.f32 0.01, %v394_v32 }
 0x864   :  { %v396_v34 = vadd.f32 %v395_v33, %v360_v23 }
 0x866   :  { %461 = vmatmul.msk.f32.vlgmr.msra.gmra.mxu3 %vm108_vm1, %v396_v34 }
 0x8e9   :  { %v425_v36 = vpop.f32.mrf.mxu3 }
 0x8ea   :  { %v426_v37 = vadd.f32 %v471_v35, %v425_v36 }
 0x8ec   :  { %429 = vst.msk [vmem:[#allocation2] sm:$0xff] %vm428_vm2, %v426_v37 }
 0x8ed   :  { %440 = dma.vmem_to_hbm [thread:$0]  %s436_s11, 128, %s438_s13, [#allocation3]  }
 0x8ee   :  { %512 = dma.done.wait [#allocation3], 128  }
 0x8ef   :  { %513 = vsyncadd [#allocation3], 4294967168 }
 0x8f0   :  { %445 = vsyncpa [#allocation3], 1 }

</bundles_post_ra>
